<compile_context>
chip_gen: v6e
topology: v6e:2x2x1
jax: 0.10.0
libtpu: 0.0.40
codegen_flags: <defaults>
</compile_context>

<pallas_src>
import jax
import jax.numpy as jnp
from jax.experimental import pallas as pl
from jax.experimental.pallas import tpu as pltpu


# ----------------------------------------------------------------------------
# Kernels: K-tiled GEMM(s) accumulating directly into the f32 output block.
# The output block index is independent of the (innermost) K axis, so it stays
# VMEM-resident across the reduction; the bias is folded into the k==0 init,
# so there is no epilogue add/cast and no scratch accumulator.  Epilogue work
# is strictly f32 and minimal (v5e has no bf16 VPU and one vector-store slot).
# ----------------------------------------------------------------------------
def _duo_linear_kernel(xl_ref, wl_ref, xs_ref, ws_ref, b_ref, o_ref):
    k = pl.program_id(3)

    @pl.when(k == 0)
    def _():
        o_ref[...] = jnp.broadcast_to(b_ref[...], o_ref.shape)

    o_ref[...] += jnp.dot(xl_ref[...], wl_ref[...],
                          preferred_element_type=jnp.float32)
    o_ref[...] += jnp.dot(xs_ref[...], ws_ref[...],
                          preferred_element_type=jnp.float32)


def _single_linear_kernel(x_ref, w_ref, b_ref, o_ref):
    k = pl.program_id(3)

    @pl.when(k == 0)
    def _():
        o_ref[...] = jnp.broadcast_to(b_ref[...], o_ref.shape)

    o_ref[...] += jnp.dot(x_ref[...], w_ref[...],
                          preferred_element_type=jnp.float32)


# ----------------------------------------------------------------------------
# Tiling helpers
# ----------------------------------------------------------------------------
def _round_up(a, m):
    return (a + m - 1) // m * m


def _choose_tile(dim, cap, granule):
    """Pick (tile, padded_dim): tile is a multiple of `granule`, <= cap, and
    divides padded_dim = round_up(dim, granule), so padding never exceeds the
    granule rounding (no ballooning for awkward sizes)."""
    base = _round_up(max(dim, 1), granule)
    if base <= cap:
        return base, base
    best = granule
    t = granule
    while t <= cap:
        if base % t == 0:
            best = t
        t += granule
    return best, base


# ----------------------------------------------------------------------------
# One-time parameter preparation (module "init"): cast weights to the compute
# dtype and pad them ONCE; fold mode/temperature scaling into the bias; plan
# the tile sizes and the K-split.  Nothing here runs per forward call.
# ----------------------------------------------------------------------------
def make_duo_params(wl, bl, ws, bs, *, mode='unweighted', temp_large=1.0,
                    temp_small=1.0, compute_dtype=jnp.bfloat16,
                    tn_cap=256, tk_cap=4096, k_splits=2,
                    vmem_input_budget=20 * 1024 * 1024):
    assert mode in ('unweighted', 'uqonly', 'asymmetric')
    wl = jnp.asarray(wl)
    ws = jnp.asarray(ws)
    Dl, C = wl.shape
    Ds, Cs = ws.shape
    assert C == Cs

    if mode == 'unweighted':
        sl, ss = 0.5, 0.5
    elif mode == 'asymmetric':
        sl, ss = 0.5 / float(temp_large), 0.5 / float(temp_small)
    else:  # 'uqonly': only the large model contributes
        sl, ss = 1.0, 0.0

    n_streams = 1 if mode == 'uqonly' else 2
    itemsize = jnp.dtype(compute_dtype).itemsize

    # --- N tiling (256 fills the v6e/v7x MXU when C >= 256; 128 when C=128) --
    tn, n_pad = _choose_tile(C, tn_cap, 128)

    # --- K tiling + reduction split (v7x megacore: 2 partial outputs) --------
    K = Dl if mode == 'uqonly' else max(Dl, Ds)
    k_splits = max(1, min(int(k_splits), _round_up(K, 128) // 128))
    k_pad = _round_up(K, 128 * k_splits)
    ks = k_pad // k_splits                      # K handled by each split
    # tk from a VMEM budget for double-buffered input tiles (stays well inside
    # the 32 MiB default scoped VMEM on all gens, incl. v7x's 64 MiB physical).
    tk_budget = vmem_input_budget // (2 * n_streams * (128 + tn) * itemsize)
    tk_budget = max(128, tk_budget // 128 * 128)
    tk_target = _round_up(-(-ks // 2), 128)     # aim ~2 pipelined steps/split
    tk, _ = _choose_tile(ks, min(tk_cap, tk_budget, tk_target), 128)
    kt_per_split = ks // tk

    # --- one-time weight prep: cast + pad (NEVER redone per call) ------------
    def prep_w(w):
        d = w.shape[0]
        w = w.astype(compute_dtype)
        return jnp.pad(w, ((0, k_pad - d), (0, n_pad - C)))

    bl = jnp.asarray(bl, jnp.float32).reshape(1, C)
    if mode == 'uqonly':
        b = bl
    else:
        bsv = jnp.asarray(bs, jnp.float32).reshape(1, C)
        b = bl * sl + bsv * ss
    # Pre-divide by k_splits so summing the partial outputs restores the bias.
    b = jnp.pad(b, ((0, 0), (0, n_pad - C))) / float(k_splits)

    params = dict(mode=mode, sl=sl, ss=ss, compute_dtype=compute_dtype,
                  num_classes=C, k_pad=k_pad, n_pad=n_pad, tk=tk, tn=tn,
                  k_splits=k_splits, kt_per_split=kt_per_split,
                  wl=prep_w(wl), b=b)
    if mode != 'uqonly':
        params['ws'] = prep_w(ws)
    return params


# ----------------------------------------------------------------------------
# DuoWrapper.forward
# ----------------------------------------------------------------------------
def duo_forward(params, x_large_nchw, x_small_nchw):
    p = params
    cdtype = p['compute_dtype']
    tk, tn = p['tk'], p['tn']
    k_pad, n_pad = p['k_pad'], p['n_pad']
    k_splits, kt_ps = p['k_splits'], p['kt_per_split']

    B = x_large_nchw.shape[0]
    granule = 16 if jnp.dtype(cdtype).itemsize <= 2 else 8   # full bf16 packing
    tm, m_pad = _choose_tile(B, 128, granule)

    def prep_x(x_nchw, scale):
        x = x_nchw.reshape(B, -1)
        if scale != 1.0:
            x = x * scale              # fold 0.5 / temperature into activations
        x = x.astype(cdtype)
        return jnp.pad(x, ((0, m_pad - B), (0, k_pad - x.shape[1])))

    xl = prep_x(x_large_nchw, p['sl'])

    def x_spec():
        return pl.BlockSpec((tm, tk), lambda s, i, j, k: (i, s * kt_ps + k))

    def w_spec():
        return pl.BlockSpec((tk, tn), lambda s, i, j, k: (s * kt_ps + k, j))

    b_spec = pl.BlockSpec((1, tn), lambda s, i, j, k: (0, j))
    out_spec = pl.BlockSpec((None, tm, tn), lambda s, i, j, k: (s, i, j))

    if p['mode'] == 'uqonly':
        # Small-model tensors never touch the kernel (no wasted HBM->VMEM DMA).
        kernel = _single_linear_kernel
        operands = (xl, p['wl'], p['b'])
        in_specs = [x_spec(), w_spec(), b_spec]
        flops = 2 * m_pad * k_pad * n_pad
    else:
        xs = prep_x(x_small_nchw, p['ss'])
        kernel = _duo_linear_kernel
        operands = (xl, p['wl'], xs, p['ws'], p['b'])
        in_specs = [x_spec(), w_spec(), x_spec(), w_spec(), b_spec]
        flops = 4 * m_pad * k_pad * n_pad

    grid = (k_splits, m_pad // tm, n_pad // tn, kt_ps)
    out_bytes = k_splits * m_pad * n_pad * 4
    cost = pl.CostEstimate(
        flops=flops, transcendentals=0,
        bytes_accessed=sum(o.size * o.dtype.itemsize for o in operands)
        + out_bytes)

    partials = pl.pallas_call(
        kernel,
        out_shape=jax.ShapeDtypeStruct((k_splits, m_pad, n_pad), jnp.float32),
        grid_spec=pltpu.PrefetchScalarGridSpec(
            num_scalar_prefetch=0,
            grid=grid,
            in_specs=in_specs,
            out_specs=out_spec,
        ),
        compiler_params=pltpu.CompilerParams(
            dimension_semantics=("parallel", "parallel", "parallel",
                                 "arbitrary")),
        cost_estimate=cost,
    )(*operands)

    # Trivial XLA add over the K-split partials (bias already pre-divided).
    out = partials.sum(axis=0)
    return out[:B, :p['num_classes']]


# ----------------------------------------------------------------------------
# Pure-JAX reference (mirrors the PyTorch module, f32 everywhere).
# TODO(synk): real model_large / model_small bodies are unspecified in the
# module; they are represented here (and in the kernel) as linear heads.
# ----------------------------------------------------------------------------
def _reference(x_large, x_small, wl, bl, ws, bs, mode, tl, ts):
    B = x_large.shape[0]
    logit_l = x_large.reshape(B, -1).astype(jnp.float32) @ wl + bl
    logit_s = x_small.reshape(B, -1).astype(jnp.float32) @ ws + bs
    if mode == 'unweighted':
        return (logit_l + logit_s) / 2
    if mode == 'uqonly':
        return logit_l
    return (logit_l / tl + logit_s / ts) / 2


if __name__ == "__main__":
    key = jax.random.PRNGKey(0)
    # Small, (8,128)-friendly shapes: B=8, 4 channels, 16x16 spatial -> D=1024
    B, CH, H, W = 8, 4, 16, 16
    NUM_CLASSES = 128
    D = CH * H * W

    k1, k2, k3, k4, k5, k6 = jax.random.split(key, 6)
    x_large = jax.random.normal(k1, (B, CH, H, W), dtype=jnp.float32)  # teacher_fl_inputs
    x_small = jax.random.normal(k2, (B, CH, H, W), dtype=jnp.float32)  # teacher_fs_inputs

    # Deterministic synthetic sub-model parameters (linear classifier heads).
    wl = jax.random.normal(k3, (D, NUM_CLASSES), dtype=jnp.float32) * 0.02
    bl = jax.random.normal(k4, (NUM_CLASSES,), dtype=jnp.float32) * 0.01
    ws = jax.random.normal(k5, (D, NUM_CLASSES), dtype=jnp.float32) * 0.02
    bs = jax.random.normal(k6, (NUM_CLASSES,), dtype=jnp.float32) * 0.01

    ok = True

    # bf16 compute path (default): loose tolerance vs the f32 reference.
    for mode, tl, ts in [('unweighted', 1.0, 1.0),
                         ('uqonly', 1.0, 1.0),
                         ('asymmetric', 1.7, 0.9)]:
        params = make_duo_params(wl, bl, ws, bs, mode=mode,
                                 temp_large=tl, temp_small=ts)
        out = duo_forward(params, x_large, x_small)
        out = jax.block_until_ready(out)
        ref = _reference(x_large, x_small, wl, bl, ws, bs, mode, tl, ts)
        if not jnp.allclose(out, ref, atol=3e-2, rtol=3e-2):
            ok = False
            print(f"MISMATCH in mode={mode} (bf16 path), "
                  f"max abs err={float(jnp.max(jnp.abs(out - ref))):.4e}")

    # f32 compute path + no K-split sanity check (tighter tolerance).
    params32 = make_duo_params(wl, bl, ws, bs, mode='unweighted',
                               compute_dtype=jnp.float32, k_splits=1)
    out32 = jax.block_until_ready(duo_forward(params32, x_large, x_small))
    ref32 = _reference(x_large, x_small, wl, bl, ws, bs, 'unweighted', 1.0, 1.0)
    if not jnp.allclose(out32, ref32, atol=1e-2, rtol=1e-2):
        ok = False
        print("MISMATCH in mode=unweighted (f32 path), "
              f"max abs err={float(jnp.max(jnp.abs(out32 - ref32))):.4e}")

    if ok:
        print("KERNEL_OK")
</pallas_src>

<mosaic_0001>
module attributes {stable_mosaic.version = 11 : i64} {
  func.func @_duo_linear_kernel(%arg0: i32, %arg1: i32, %arg2: i32, %arg3: i32, %arg4: memref<16x256xbf16, #tpu.memory_space<vmem>>, %arg5: memref<256x128xbf16, #tpu.memory_space<vmem>>, %arg6: memref<16x256xbf16, #tpu.memory_space<vmem>>, %arg7: memref<256x128xbf16, #tpu.memory_space<vmem>>, %arg8: memref<1x128xf32, #tpu.memory_space<vmem>>, %arg9: memref<1x16x128xf32, #tpu.memory_space<vmem>>) attributes {dimension_semantics = [#tpu.dimension_semantics<parallel>, #tpu.dimension_semantics<parallel>, #tpu.dimension_semantics<parallel>, #tpu.dimension_semantics<arbitrary>], iteration_bounds = array<i64: 2, 1, 1, 2>, scalar_prefetch = 0 : i64, scratch_operands = 0 : i64, tpu.core_type = #tpu.core_type<tc>, window_params = [{transform_indices = @transform_0, window_bounds = array<i64: 16, 256>}, {transform_indices = @transform_1, window_bounds = array<i64: 256, 128>}, {transform_indices = @transform_2, window_bounds = array<i64: 16, 256>}, {transform_indices = @transform_3, window_bounds = array<i64: 256, 128>}, {transform_indices = @transform_4, window_bounds = array<i64: 1, 128>}, {transform_indices = @transform_5, window_bounds = array<i64: 1, 16, 128>}]} {
    %c0_i32 = arith.constant 0 : i32
    %0 = arith.cmpi eq, %arg3, %c0_i32 : i32
    %1 = arith.extui %0 : i1 to i32
    %c0_i32_0 = arith.constant 0 : i32
    %2 = arith.cmpi ne, %1, %c0_i32_0 : i32
    scf.if %2 {
      %c0_21 = arith.constant 0 : index
      %c0_22 = arith.constant 0 : index
      %21 = vector.load %arg8[%c0_21, %c0_22] : memref<1x128xf32, #tpu.memory_space<vmem>>, vector<1x128xf32>
      %22 = vector.shape_cast %21 : vector<1x128xf32> to vector<1x128xf32>
      %23 = vector.broadcast %22 : vector<1x128xf32> to vector<16x128xf32>
      %c0_23 = arith.constant 0 : index
      %c0_24 = arith.constant 0 : index
      %c0_25 = arith.constant 0 : index
      %24 = vector.load %arg9[%c0_23, %c0_24, %c0_25] : memref<1x16x128xf32, #tpu.memory_space<vmem>>, vector<1x16x128xf32>
      %25 = vector.shape_cast %24 : vector<1x16x128xf32> to vector<16x128xf32>
      %26 = vector.shape_cast %23 : vector<16x128xf32> to vector<1x16x128xf32>
      tpu.vector_store %arg9[%c0_23, %c0_24, %c0_25], %26 {strides = array<i32>} : memref<1x16x128xf32, #tpu.memory_space<vmem>>, vector<1x16x128xf32>,
    } else {
    }
    %c0 = arith.constant 0 : index
    %c0_1 = arith.constant 0 : index
    %c0_2 = arith.constant 0 : index
    %3 = vector.load %arg9[%c0, %c0_1, %c0_2] : memref<1x16x128xf32, #tpu.memory_space<vmem>>, vector<1x16x128xf32>
    %4 = vector.shape_cast %3 : vector<1x16x128xf32> to vector<16x128xf32>
    %c0_3 = arith.constant 0 : index
    %c0_4 = arith.constant 0 : index
    %5 = vector.load %arg4[%c0_3, %c0_4] : memref<16x256xbf16, #tpu.memory_space<vmem>>, vector<16x256xbf16>
    %c0_5 = arith.constant 0 : index
    %c0_6 = arith.constant 0 : index
    %6 = vector.load %arg5[%c0_5, %c0_6] : memref<256x128xbf16, #tpu.memory_space<vmem>>, vector<256x128xbf16>
    %cst = arith.constant dense<0.000000e+00> : vector<16x128xf32>
    %7 = tpu.matmul %5, %6, %cst {dimension_numbers = #tpu.dot_dimension_numbers<[1], [0], [0], [1], [0, 0, 1, 1], [], []>} : vector<16x256xbf16>, vector<256x128xbf16>, vector<16x128xf32> -> vector<16x128xf32>
    %8 = arith.addf %4, %7 : vector<16x128xf32>
    %c0_7 = arith.constant 0 : index
    %c0_8 = arith.constant 0 : index
    %c0_9 = arith.constant 0 : index
    %9 = vector.load %arg9[%c0_7, %c0_8, %c0_9] : memref<1x16x128xf32, #tpu.memory_space<vmem>>, vector<1x16x128xf32>
    %10 = vector.shape_cast %9 : vector<1x16x128xf32> to vector<16x128xf32>
    %11 = vector.shape_cast %8 : vector<16x128xf32> to vector<1x16x128xf32>
    tpu.vector_store %arg9[%c0_7, %c0_8, %c0_9], %11 {strides = array<i32>} : memref<1x16x128xf32, #tpu.memory_space<vmem>>, vector<1x16x128xf32>,
    %c0_10 = arith.constant 0 : index
    %c0_11 = arith.constant 0 : index
    %c0_12 = arith.constant 0 : index
    %12 = vector.load %arg9[%c0_10, %c0_11, %c0_12] : memref<1x16x128xf32, #tpu.memory_space<vmem>>, vector<1x16x128xf32>
    %13 = vector.shape_cast %12 : vector<1x16x128xf32> to vector<16x128xf32>
    %c0_13 = arith.constant 0 : index
    %c0_14 = arith.constant 0 : index
    %14 = vector.load %arg6[%c0_13, %c0_14] : memref<16x256xbf16, #tpu.memory_space<vmem>>, vector<16x256xbf16>
    %c0_15 = arith.constant 0 : index
    %c0_16 = arith.constant 0 : index
    %15 = vector.load %arg7[%c0_15, %c0_16] : memref<256x128xbf16, #tpu.memory_space<vmem>>, vector<256x128xbf16>
    %cst_17 = arith.constant dense<0.000000e+00> : vector<16x128xf32>
    %16 = tpu.matmul %14, %15, %cst_17 {dimension_numbers = #tpu.dot_dimension_numbers<[1], [0], [0], [1], [0, 0, 1, 1], [], []>} : vector<16x256xbf16>, vector<256x128xbf16>, vector<16x128xf32> -> vector<16x128xf32>
    %17 = arith.addf %13, %16 : vector<16x128xf32>
    %c0_18 = arith.constant 0 : index
    %c0_19 = arith.constant 0 : index
    %c0_20 = arith.constant 0 : index
    %18 = vector.load %arg9[%c0_18, %c0_19, %c0_20] : memref<1x16x128xf32, #tpu.memory_space<vmem>>, vector<1x16x128xf32>
    %19 = vector.shape_cast %18 : vector<1x16x128xf32> to vector<16x128xf32>
    %20 = vector.shape_cast %17 : vector<16x128xf32> to vector<1x16x128xf32>
    tpu.vector_store %arg9[%c0_18, %c0_19, %c0_20], %20 {strides = array<i32>} : memref<1x16x128xf32, #tpu.memory_space<vmem>>, vector<1x16x128xf32>,
    return
  }
  func.func @transform_0(%arg0: i32, %arg1: i32, %arg2: i32, %arg3: i32) -> (i32, i32) {
    %c2_i32 = arith.constant 2 : i32
    %0 = arith.muli %arg0, %c2_i32 : i32
    %1 = arith.addi %0, %arg3 : i32
    %c0_i32 = arith.constant 0 : i32
    return %arg1, %1 : i32, i32
  }
  func.func @transform_1(%arg0: i32, %arg1: i32, %arg2: i32, %arg3: i32) -> (i32, i32) {
    %c2_i32 = arith.constant 2 : i32
    %0 = arith.muli %arg0, %c2_i32 : i32
    %1 = arith.addi %0, %arg3 : i32
    %c0_i32 = arith.constant 0 : i32
    return %1, %arg2 : i32, i32
  }
  func.func @transform_2(%arg0: i32, %arg1: i32, %arg2: i32, %arg3: i32) -> (i32, i32) {
    %c2_i32 = arith.constant 2 : i32
    %0 = arith.muli %arg0, %c2_i32 : i32
    %1 = arith.addi %0, %arg3 : i32
    %c0_i32 = arith.constant 0 : i32
    return %arg1, %1 : i32, i32
  }
  func.func @transform_3(%arg0: i32, %arg1: i32, %arg2: i32, %arg3: i32) -> (i32, i32) {
    %c2_i32 = arith.constant 2 : i32
    %0 = arith.muli %arg0, %c2_i32 : i32
    %1 = arith.addi %0, %arg3 : i32
    %c0_i32 = arith.constant 0 : i32
    return %1, %arg2 : i32, i32
  }
  func.func @transform_4(%arg0: i32, %arg1: i32, %arg2: i32, %arg3: i32) -> (i32, i32) {
    %c0_i32 = arith.constant 0 : i32
    %c0_i32_0 = arith.constant 0 : i32
    return %c0_i32, %arg2 : i32, i32
  }
  func.func @transform_5(%arg0: i32, %arg1: i32, %arg2: i32, %arg3: i32) -> (i32, i32, i32) {
    %c0_i32 = arith.constant 0 : i32
    return %arg0, %arg1, %arg2 : i32, i32, i32
  }
}

</mosaic_0001>

<bundles_post_ra>
// kernel: tpu_custom_call.1
= control target key start
LH: loop header
LB: loop body
LE: loop exit
PB: predicated region body
PF: predicated region fallthrough
CT: control target
= control target key end

     0   :  { %s1959_s0 = inlined_call_operand.hbm [shape: bf16[16,1024], index: 0, kind: input, shape index: {}]   ;;  %s1960_s1 = inlined_call_operand.hbm [shape: bf16[1024,128], index: 1, kind: input, shape index: {}]   ;;  %s1961_s2 = inlined_call_operand.hbm [shape: bf16[16,1024], index: 2, kind: input, shape index: {}]   ;;  %s1962_s3 = inlined_call_operand.hbm [shape: bf16[1024,128], index: 3, kind: input, shape index: {}]   ;;  %s1963_s4 = inlined_call_operand.vmem [shape: f32[1,128], index: 4, kind: input, shape index: {}]   ;;  %s1964_s5 = inlined_call_operand.hbm [shape: f32[2,16,128], index: 5, kind: output, shape index: {}]  }
   0x1   :  { %1982 = sst [smem:[#allocation27_spill]] %s1959_s0 }
   0x2   :  { %1983 = sst [smem:[#allocation28_spill]] %s1960_s1 }
   0x3   :  { %1984 = sst [smem:[#allocation29_spill]] %s1964_s5 }
   0x4   :  { %10 = vsyncpa [#allocation3], 0 }
   0x5   :  { %12 = vsyncpa [#allocation3 + $0x1], 0 }
   0x6   :  { %13 = vsyncpa [#allocation6], 0 }
   0x7   :  { %15 = vsyncpa [#allocation6 + $0x1], 0 }
   0x8   :  { %16 = vsyncpa [#allocation9], 0 }
   0x9   :  { %18 = vsyncpa [#allocation9 + $0x1], 0 }
   0xa   :  { %19 = vsyncpa [#allocation4], 0 }
   0xb   :  { %21 = vsyncpa [#allocation4 + $0x1], 0  ;;  %s1627_s18 = smov 0   ;;  %s1629_s19 = smov 0  }
   0xc   :  { %s1631_s20 = smov 0   ;;  %s1633_s21 = smov 0  }
   0xd   :  { %s1635_s22 = smov 0   ;;  %s1637_s23 = smov 0  }
   0xe   :  { %s1639_s24 = smov 0   ;;  %s1641_s25 = smov 0  }
   0xf   :  { %s1643_s26 = smov 0   ;;  %s1645_s27 = smov 0  }
  0x10   :  { %s1647_s28 = smov 0  }
  0x11 LB: > { %1985 = sst [smem:[#allocation15_spill]] %s1543_s18  ;;  %s1681_s29 = sadd.s32 4294967295, %s1583_s28   ;;  %s1583_s28 = sphi %s1647_s28, %s27_s28   ;;  %s1579_s27 = sphi %s1645_s27, %s2023_s27   ;;  %s1575_s26 = sphi %s1643_s26, %s2022_s26   ;;  %s1571_s25 = sphi %s1641_s25, %s2021_s25   ;;  %s1567_s24 = sphi %s1639_s24, %s2028_s24   ;;  %s1563_s23 = sphi %s1637_s23, %s2019_s23   ;;  %s1559_s22 = sphi %s1635_s22, %s2027_s22   ;;  %s1555_s21 = sphi %s1633_s21, %s2026_s21   ;;  %s1551_s20 = sphi %s1631_s20, %s2017_s20   ;;  %s1547_s19 = sphi %s1629_s19, %s2025_s19   ;;  %s1543_s18 = sphi %s1627_s18, %s2024_s18  }
  0x12   : > { %1986 = sst [smem:[#allocation16_spill]] %s1551_s20  ;;  %s42_s6 = sadd.s32 1, %s1575_s26 }
  0x13   : > { %1987 = sst [smem:[#allocation17_spill]] %s1563_s23  ;;  %s53_s7 = sadd.s32 1, %s1579_s27 }
  0x14   : > { %1988 = sst [smem:[#allocation18_spill]] %s1575_s26  ;;  %p43_p0 = scmp.ge.s32.totalorder %s42_s6, 2 }
  0x15   : > { %1989 = sst [smem:[#allocation19_spill]] %s1579_s27  ;;  %s1056_s8 = sshll.u32 %s1579_s27, 1 }
  0x16   : > { %1990 = sst [smem:[#allocation20_spill]] %s1583_s28  ;;  %s1688_s9 = sadd.s32 %s1575_s26, %s1056_s8 }
  0x17   : > { %s66_s10 = sadd.s32 1, %s1563_s23  ;;  %s2030_s6 = smov (%p43_p0, %s42_s6), 0 }
  0x18   : > { %1991 = sst [smem:[#allocation21_spill]] %s2030_s6  ;;  %s2032_s7 = smov (!%p43_p0, %s53_s7), %s1579_s27 }
  0x19   : > { %p73_p1 = scmp.ne.s32.totalorder %s1563_s23, %s1559_s22  ;;  %p74_p2 = scmp.eq.s32.totalorder %s1583_s28, 0 }
  0x1a   : > { %p55_p3 = scmp.ge.s32.totalorder %s2032_s7, 2  ;;  %p79_p4 = scmp.ne.s32.totalorder %s1559_s22, %s1555_s21 }
  0x1b   : > { %p1698_p5 = por %p74_p2, %p73_p1  ;;  %p80_p6 = scmp.eq.s32.totalorder %s1681_s29, 0 }
  0x1c   : > { %s2034_s7 = smov (%p55_p3, %s2032_s7), 0  ;;  %s218_s13 = sadd.s32 1, %s1551_s20 }
  0x1d   : > { %1993 = sst [smem:[#allocation22_spill]] %s2034_s7  ;;  %p1705_p7 = por %p80_p6, %p79_p4 }
  0x1e   : > { %s1057_s14 = sshll.u32 %s2034_s7, 1  ;;  %s211_s15 = ssub.s32 %s1579_s27, %s2034_s7 }
  0x1f   : > { %s60_s16 = sadd.s32 %s1057_s14, %s2030_s6  ;;  %p216_p8 = scmp.eq.s32.totalorder %s211_s15, 0 }
  0x20   : > { %s62_s17 = ssub.s32 %s1688_s9, %s60_s16  ;;  %p228_p9 = scmp.ne.s32.totalorder %s1551_s20, %s1547_s19 }
  0x21   : > { %p64_p10 = scmp.eq.s32.totalorder %s62_s17, 0  ;;  %p229_p11 = scmp.eq.s32.totalorder %s1681_s29, 3 }
  0x22   : > { %s1719_s21 = scalar_select %p216_p8, %s1551_s20, %s218_s13  }
  0x23   : > { %s1722_s8 = scalar_select %p64_p10, %s1563_s23, %s66_s10  }
  0x24   : > { %1995 = sst [smem:[#allocation23_spill]] %s1719_s21  ;;  %p1724_p12 = por %p229_p11, %p228_p9 }
  0x25   : > { %1996 = sst [smem:[#allocation24_spill]] %s1722_s8  ;;  %p234_p13 = scmp.ne.s32.totalorder %s1547_s19, %s1543_s18 }
  0x26   : > { %s1997_s30 = scalar_select %p1724_p12, 1, 0 }
  0x27   : > { %s1999_s7 = sadd.s32 4294967294, %s1583_s28   ;;  %p1208_p1 = scmp.lt.s32.totalorder %s1583_s28, 4 }
  0x28   : > { %1998 = sst [smem:[#allocation25_spill]] %s1997_s30  ;;  %p235_p0 = scmp.eq.s32.totalorder %s1999_s7, 3 }
  0x29   : > { %s1734_s14 = sand.u32 1, %s1563_s23   ;;  %s287_s13 = sand.u32 1, %s1583_s28  }
  0x2a   : > { %p1736_p2 = por %p235_p0, %p234_p13  ;;  %p1743_p3 = pnand %p1208_p1, %p1698_p5 }
  0x2b   : > { %s1971_s16 = sshll.u32 %s1734_s14, 7  ;;  %s1972_s17 = sshll.u32 %s1688_s9, 11 }
  0x2c   : > { %s2000_s15 = scalar_select %p1736_p2, 1, 0 }
  0x2d   : > { %s2003_s1 = sld [smem:[#allocation28_spill]]  ;;  %s291_s26 = scalar_lea.vmem [#allocation5], %s1971_s16 }
  0x2e   : > { %2001 = sst [smem:[#allocation26_spill]] %s2000_s15  ;;  %s301_s8 = sshll.u32 %s291_s26, 4  ;;  %s302_s8 = int_to_ptr.vmem [resolvable:$true] %s301_s8 }
  0x2f   : > { %p1083_p4 = scmp.ge.s32.totalorder %s1583_s28, 1  ;;  %s1757_s23 = scalar_lea.sflag [#allocation6], %s287_s13 }
  0x30   : > { %p1345_p5 = pneg %p1743_p3  ;;  %s1356_s11 = scalar_lea.vmem %s302_s8, 2048 }
  0x31   : > { %p1357_p6 = scmp.ne.s32.totalorder %s302_s8, %s1356_s11  ;;  %s1585_s21 = smov [#allocation5]  }
  0x32   : > { %s1361_s20 = sshll.u32 %s1585_s21, 4  ;;  %s1362_s20 = int_to_ptr.vmem [resolvable:$false] %s1361_s20 }
  0x33   : > { %s300_s27 = scalar_lea.hbm %s2003_s1, %s1972_s17  ;;  %p1359_p8 = pnand %p1357_p6, %p1345_p5 }
  0x34   : > { %s1363_s6 = scalar_lea.vmem %s1362_s20, 4096  ;;  %p1364_p10 = scmp.lt.s32.totalorder %s302_s8, %s1362_s20 }
  0x35   : > { %p1360_p9 = pneg %p1359_p8  ;;  %p1365_p11 = scmp.lt.s32.totalorder %s1363_s6, %s1356_s11 }
  0x37   : > { %p1366_p13 = por %p1365_p11, %p1364_p10 }
  0x39   : > { %p1367_p0 = pnand %p1366_p13, %p1360_p9 }
  0x3b   : > { %1370 = shalt.err (!%p1367_p0)
}
  0x3c   : > { %s1975_s26 = smov 64   ;;  %s1976_s13 = smov 4  }
  0x3d   : > { %1197 = dma.hbm_to_vmem [thread:$0]  (!%p1743_p3), %s300_s27, 2048, %s302_s8, %s1757_s23, %s1975_s26, %s1975_s26, %s1976_s13  }
  0x3e   : > { %p359_p1 = scmp.lt.s32.totalorder %s1583_s28, 5  ;;  %s1067_s21 = sshll.u32 %s1734_s14, 4 }
  0x3f   : > { %s1132_s7 = sshll.u32 %s1688_s9, 7  ;;  %s2005_s0 = sld [smem:[#allocation27_spill]] }
  0x40   : > { %p1773_p6 = pnand %p1083_p4, %p359_p1  ;;  %s265_s17 = scalar_lea.vmem [#allocation2], %s1067_s21 }
  0x41   : > { %s277_s1 = sshll.u32 %s265_s17, 4  ;;  %s262_s15 = scalar_lea.sflag [#allocation3], %s1734_s14  ;;  %s278_s1 = int_to_ptr.vmem [resolvable:$true] %s277_s1 }
  0x42   : > { %s1384_s18 = scalar_lea.vmem %s278_s1, 256  ;;  %s1588_s27 = smov [#allocation2]  }
  0x43   : > { %p1385_p8 = scmp.ne.s32.totalorder %s278_s1, %s1384_s18  ;;  %s1389_s8 = sshll.u32 %s1588_s27, 4  ;;  %s1390_s8 = int_to_ptr.vmem [resolvable:$false] %s1389_s8 }
  0x44   : > { %s1391_s26 = scalar_lea.vmem %s1390_s8, 512  ;;  %p1392_p4 = scmp.lt.s32.totalorder %s278_s1, %s1390_s8 }
  0x45   : > { %s276_s16 = scalar_lea.hbm %s2005_s0, %s1132_s7  ;;  %p1387_p9 = pnand %p1385_p8, %p1345_p5 }
  0x46   : > { %p1393_p11 = scmp.lt.s32.totalorder %s1391_s26, %s1384_s18 }
  0x47   : > { %p1388_p10 = pneg %p1387_p9 }
  0x48   : > { %p1394_p13 = por %p1393_p11, %p1392_p4 }
  0x4a   : > { %p1395_p0 = pnand %p1394_p13, %p1388_p10 }
  0x4c   : > { %1398 = shalt.err (!%p1395_p0)
}
  0x4d   : > { %s1589_s11 = smov 512   ;;  %s1590_s17 = smov 128  }
  0x4e   : > { %s1591_s6 = smov 8   ;;  %s326_s28 = scalar_lea.hbm %s1961_s2, %s1132_s7 }
  0x4f   : > { %1194 = dma.hbm_to_vmem [thread:$0]  (!%p1743_p3), %s276_s16, 256, %s278_s1, %s262_s15, %s1589_s11, %s1590_s17, %s1591_s6  }
  0x50   : > { %s315_s5 = scalar_lea.vmem [#allocation7], %s1067_s21  ;;  %s1592_s18 = smov [#allocation7]  }
  0x51   : > { %s327_s27 = sshll.u32 %s315_s5, 4  ;;  %s1417_s26 = sshll.u32 %s1592_s18, 4  ;;  %s328_s27 = int_to_ptr.vmem [resolvable:$true] %s327_s27  ;;  %s1418_s26 = int_to_ptr.vmem [resolvable:$false] %s1417_s26 }
  0x52   : > { %s1412_s30 = scalar_lea.vmem %s328_s27, 256  ;;  %s1419_s8 = scalar_lea.vmem %s1418_s26, 512 }
  0x53   : > { %p1413_p1 = scmp.ne.s32.totalorder %s328_s27, %s1412_s30  ;;  %p1420_p10 = scmp.lt.s32.totalorder %s328_s27, %s1418_s26 }
  0x54   : > { %p1421_p4 = scmp.lt.s32.totalorder %s1419_s8, %s1412_s30 }
  0x55   : > { %p1415_p8 = pnand %p1413_p1, %p1345_p5 }
  0x56   : > { %p1422_p11 = por %p1421_p4, %p1420_p10 }
  0x57   : > { %p1416_p9 = pneg %p1415_p8 }
  0x59   : > { %p1423_p13 = pnand %p1422_p11, %p1416_p9 }
  0x5b   : > { %1426 = shalt.err (!%p1423_p13)
}
  0x5c   : > { %1200 = dma.hbm_to_vmem [thread:$0]  (!%p1743_p3), %s326_s28, 256, %s328_s27, %s1757_s23, %s1589_s11, %s1590_s17, %s1591_s6  }
  0x5d   : > { %s2006_s0 = sshll.u32 %s1688_s9, 11  ;;  %s2007_s16 = sshll.u32 %s1734_s14, 7 }
  0x5e   : > { %s350_s15 = scalar_lea.hbm %s1962_s3, %s2006_s0  ;;  %s341_s13 = scalar_lea.vmem [#allocation8], %s2007_s16 }
  0x5f   : > { %s351_s21 = sshll.u32 %s341_s13, 4  ;;  %s338_s30 = scalar_lea.sflag [#allocation9], %s1734_s14  ;;  %s352_s21 = int_to_ptr.vmem [resolvable:$true] %s351_s21 }
  0x60   : > { %s1440_s7 = scalar_lea.vmem %s352_s21, 2048  ;;  %s1593_s18 = smov [#allocation8]  }
  0x61   : > { %p1441_p0 = scmp.ne.s32.totalorder %s352_s21, %s1440_s7  ;;  %s1445_s26 = sshll.u32 %s1593_s18, 4  ;;  %s1446_s26 = int_to_ptr.vmem [resolvable:$false] %s1445_s26 }
  0x62   : > { %s1447_s23 = scalar_lea.vmem %s1446_s26, 4096  ;;  %p1448_p9 = scmp.lt.s32.totalorder %s352_s21, %s1446_s26 }
  0x63   : > { %p1443_p1 = pnand %p1441_p0, %p1345_p5  ;;  %p1449_p10 = scmp.lt.s32.totalorder %s1447_s23, %s1440_s7 }
  0x65   : > { %p1444_p8 = pneg %p1443_p1  ;;  %p1450_p4 = por %p1449_p10, %p1448_p9 }
  0x67   : > { %p1451_p11 = pnand %p1450_p4, %p1444_p8 }
  0x69   : > { %1454 = shalt.err (!%p1451_p11)
}
  0x6a   : > { %s2008_s28 = smov 4   ;;  %s2009_s9 = smov 64  }
  0x6b   : > { %1203 = dma.hbm_to_vmem [thread:$0]  (!%p1743_p3), %s350_s15, 2048, %s352_s21, %s338_s30, %s2009_s9, %s2009_s9, %s2008_s28  }
  0x6c   : > { %363 = sbr.rel (%p1773_p6) target bundleno = 381 (0x17d), region = 40  ;;  %s365_s14 = sand.u32 (!%p1773_p6), 1, %s1559_s22  }
  0x6d   : > { %s1084_s11 = sshll.u32 (!%p1773_p6), %s365_s14, 4  ;;  %s366_s17 = scalar_lea.sflag (!%p1773_p6), [#allocation3], %s365_s14 }
  0x6e   : > { %s1816_s6 = scalar_lea.vmem (!%p1773_p6), [#allocation2], %s1084_s11 }
  0x71   : > { %1526 = dma.done.wait (%p1705_p7), %s366_s17, 256  }
  0x72   : > { %1528 = vsyncadd (%p1705_p7), %s366_s17, 4294967040  ;;  %s374_s10 = sand.u32 1, %s1681_s29   ;;  %s1085_s27 = sshll.u32 %s365_s14, 7 }
  0x73   : > { %s375_s8 = scalar_lea.sflag [#allocation6], %s374_s10  ;;  %s1823_s0 = scalar_lea.vmem [#allocation5], %s1085_s27 }
  0x74   : > { %1530 = dma.done.wait (%p1705_p7), %s375_s8, 2304  }
  0x75   : > { %1532 = vsyncadd (%p1705_p7), %s375_s8, 4294964992  ;;  %s1829_s20 = scalar_lea.vmem [#allocation7], %s1084_s11  ;;  %s393_s1 = scalar_lea.sflag [#allocation9], %s365_s14 }
  0x76   : > { %s1831_s5 = scalar_lea.vmem [#allocation8], %s1085_s27 }
  0x77   : > { %1534 = dma.done.wait (%p1705_p7), %s393_s1, 2048  }
  0x78   : > { %1536 = vsyncadd (%p1705_p7), %s393_s1, 4294965248  ;;  %s438_s29 = sand.u32 1, %s1547_s19   ;;  %p1089_p3 = scmp.ne.s32.totalorder %s1567_s24, 0 }
  0x79   : > { %s1088_s15 = sshll.u32 %s438_s29, 4 }
  0x7a   : > { %s1840_s16 = scalar_lea.vmem [#allocation10], %s1088_s15  ;;  %463 = sbr.rel (%p1089_p3) target bundleno = 129 (0x81), region = 60 }
  0x7f   : > { %v1090_v0 = vld [vmem:[%s1963_s4] ss:$0 sm:$0xff] }
  0x80   : > { %471 = vst [vmem:[%s1840_s16] sm:$0xff] %v1090_v0  ;;  %472 = vst [vmem:[%s1840_s16 + $0x8] sm:$0xff] %v1090_v0 }
  0x81 PF: > { %v1305_v1 = vld [vmem:[%s1823_s0 + $0x78] sm:$0xff]   ;;  %v1307_v3 = vld [vmem:[%s1823_s0 + $0x70] sm:$0xff]   ;;  %v1311_v7 = vld [vmem:[%s1823_s0 + $0x68] sm:$0xff]   ;;  %s1136_s12 = sshll.u32 %s1571_s25, 8  ;;  %s864_s30 = sshll.u32 %s1840_s16, 4  ;;  %s1894_s30 = int_to_ptr.vmem [resolvable:$true] %s864_s30 }
  0x82   : > { %v1306_v2 = vld [vmem:[%s1823_s0 + $0x38] sm:$0xff]   ;;  %1137 = vmatprep.subr.bf16.mxu0 %v1305_v1  ;;  %v1309_v5 = vld [vmem:[%s1823_s0 + $0x30] sm:$0xff]   ;;  %v1313_v9 = vld [vmem:[%s1823_s0 + $0x28] sm:$0xff]   ;;  %s2011_s26 = sld [smem:[#allocation29_spill]]  ;;  %s1899_s28 = scalar_lea.sflag [#allocation4], %s438_s29 }
  0x83   : > { %1138 = vmatpush3.bf16.msra.mxu0 %v1306_v2  ;;  %v1308_v4 = vld [vmem:[%s1831_s5 + $0x78] sm:$0xff]   ;;  %v1312_v8 = vld [vmem:[%s1831_s5 + $0x70] sm:$0xff]   ;;  %v1315_v11 = vld [vmem:[%s1823_s0 + $0x60] sm:$0xff]   ;;  %s1455_s25 = scalar_lea.vmem %s1894_s30, 256  ;;  %s1594_s14 = smov [#allocation10]  }
  0x84   : > { %1139 = vmatprep.subr.bf16.mxu0 %v1307_v3  ;;  %1159 = vmatprep.subr.bf16.mxu1 %v1308_v4  ;;  %v1310_v6 = vld [vmem:[%s1831_s5 + $0x38] sm:$0xff]   ;;  %v1314_v10 = vld [vmem:[%s1831_s5 + $0x30] sm:$0xff]   ;;  %v1316_v12 = vld [vmem:[%s1831_s5 + $0x68] sm:$0xff]   ;;  %p1456_p7 = scmp.ne.s32.totalorder %s1894_s30, %s1455_s25  ;;  %s1459_s11 = sshll.u32 %s1594_s14, 4  ;;  %s1460_s11 = int_to_ptr.vmem [resolvable:$false] %s1459_s11 }
  0x85   : > { %1160 = vmatpush3.bf16.msra.mxu1 %v1310_v6  ;;  %v1317_v13 = vld [vmem:[%s1823_s0 + $0x20] sm:$0xff]   ;;  %v1318_v14 = vld [vmem:[%s1831_s5 + $0x28] sm:$0xff]   ;;  %v1319_v15 = vld [vmem:[%s1823_s0 + $0x58] sm:$0xff]   ;;  %s1461_s17 = scalar_lea.vmem %s1460_s11, 512  ;;  %p1462_p13 = scmp.lt.s32.totalorder %s1894_s30, %s1460_s11 }
  0x86   : > { %1161 = vmatprep.subr.bf16.mxu1 %v1312_v8  ;;  %v1320_v16 = vld [vmem:[%s1831_s5 + $0x60] sm:$0xff]   ;;  %v1321_v17 = vld [vmem:[%s1823_s0 + $0x18] sm:$0xff]   ;;  %v1323_v19 = vld [vmem:[%s1823_s0 + $0x50] sm:$0xff]   ;;  %p1457_p5 = pnand %p1456_p7, %p1724_p12  ;;  %p1463_p0 = scmp.lt.s32.totalorder %s1461_s17, %s1455_s25 }
  0x87   : > { %1140 = vmatpush3.bf16.msra.mxu0 %v1309_v5  ;;  %v1322_v18 = vld [vmem:[%s1831_s5 + $0x20] sm:$0xff]   ;;  %v1324_v20 = vld [vmem:[%s1831_s5 + $0x58] sm:$0xff]   ;;  %v1325_v21 = vld [vmem:[%s1823_s0 + $0x10] sm:$0xff]  }
  0x88   : > { %1141 = vmatprep.subr.bf16.mxu0 %v1311_v7  ;;  %v1326_v22 = vld [vmem:[%s1831_s5 + $0x18] sm:$0xff]   ;;  %v1327_v23 = vld [vmem:[%s1823_s0 + $0x48] sm:$0xff]   ;;  %v1328_v24 = vld [vmem:[%s1831_s5 + $0x50] sm:$0xff]   ;;  %s2012_s9 = smov %s2011_s26  ;;  %s1892_s23 = scalar_lea.hbm %s2011_s26, %s1136_s12 }
  0x89   : > { %1162 = vmatpush3.bf16.msra.mxu1 %v1314_v10  ;;  %v1329_v25 = vld [vmem:[%s1823_s0 + $0x8] sm:$0xff]   ;;  %v1330_v26 = vld [vmem:[%s1831_s5 + $0x10] sm:$0xff]   ;;  %v1331_v27 = vld [vmem:[%s1823_s0 + $0x40] sm:$0xff]   ;;  %p1458_p6 = pneg %p1457_p5  ;;  %p1464_p1 = por %p1463_p0, %p1462_p13 }
  0x8a   : > { %1163 = vmatprep.subr.bf16.mxu1 %v1316_v12  ;;  %v1332_v28 = vld [vmem:[%s1831_s5 + $0x48] sm:$0xff]   ;;  %v1333_v29 = vld [vmem:[%s1823_s0] sm:$0xff]  }
  0x8b   : > { %1142 = vmatpush3.bf16.msra.mxu0 %v1313_v9  ;;  %v1334_v30 = vld [vmem:[%s1831_s5 + $0x8] sm:$0xff]   ;;  %v1338_v33 = vld [vmem:[%s1831_s5 + $0x40] sm:$0xff]   ;;  %p1465_p8 = pnand %p1464_p1, %p1458_p6 }
  0x8c   : > { %1143 = vmatprep.subr.bf16.mxu0 %v1315_v11  ;;  %v1335_v31 = vld [vmem:[%s1816_s6] ss:$8 sps:$4 sm:$0xff]   ;;  %v1337_v32 = vld [vmem:[%s1816_s6 + $0x4] ss:$8 sps:$4 sm:$0xff]  }
  0x8d   : > { %1164 = vmatpush3.bf16.msra.mxu1 %v1318_v14  ;;  %647 = vmatprep.mubr.bf16.mxu0 %v1337_v32  ;;  %v1339_v34 = vld [vmem:[%s1831_s5] sm:$0xff]   ;;  %v474_v44 = vld [vmem:[%s1840_s16 + $0x8] sm:$0xff] }
  0x8e   : > { %1165 = vmatprep.subr.bf16.mxu1 %v1320_v16  ;;  %v1340_v35 = vld [vmem:[%s1829_s20] ss:$8 sps:$4 sm:$0xff]   ;;  %v1342_v36 = vld [vmem:[%s1829_s20 + $0x4] ss:$8 sps:$4 sm:$0xff]  }
  0x8f   : > { %1144 = vmatpush3.bf16.msra.mxu0 %v1317_v13  ;;  %834 = vmatprep.mubr.bf16.mxu1 %v1342_v36  ;;  %v473_v38 = vld [vmem:[%s1840_s16] sm:$0xff] }
  0x90   : > { %1145 = vmatprep.subr.bf16.mxu0 %v1319_v15 }
  0x91   : > { %1166 = vmatpush3.bf16.msra.mxu1 %v1322_v18 }
  0x92   : > { %1167 = vmatprep.subr.bf16.mxu1 %v1324_v20 }
  0x93   : > { %1146 = vmatpush3.bf16.msra.mxu0 %v1321_v17 }
  0x94   : > { %1147 = vmatprep.subr.bf16.mxu0 %v1323_v19 }
  0x95   : > { %1168 = vmatpush3.bf16.msra.mxu1 %v1326_v22 }
  0x96   : > { %1169 = vmatprep.subr.bf16.mxu1 %v1328_v24 }
  0x97   : > { %1148 = vmatpush3.bf16.msra.mxu0 %v1325_v21 }
  0x98   : > { %1149 = vmatprep.subr.bf16.mxu0 %v1327_v23 }
  0x99   : > { %1170 = vmatpush3.bf16.msra.mxu1 %v1330_v26 }
  0x9a   : > { %1171 = vmatprep.subr.bf16.mxu1 %v1332_v28 }
  0x9b   : > { %1150 = vmatpush3.bf16.msra.mxu0 %v1329_v25 }
  0x9c   : > { %1151 = vmatprep.subr.bf16.mxu0 %v1331_v27 }
  0x9d   : > { %1172 = vmatpush3.bf16.msra.mxu1 %v1334_v30 }
  0x9e   : > { %1173 = vmatprep.subr.bf16.mxu1 %v1338_v33 }
  0x9f   : > { %1152 = vmatpush3.bf16.msra.mxu0 %v1333_v29 }
  0xa1   : > { %1174 = vmatpush3.bf16.msra.mxu1 %v1339_v34 }
  0xa2   : > { %648 = vmatmul.mubr.bf16.vlgmr.msra.gmra.mxu0 %v1335_v31 }
  0xa4   : > { %835 = vmatmul.mubr.bf16.vlgmr.msra.gmra.mxu1 %v1340_v35 }
 0x162   : > { %v1153_v37 = vpop.f32.mrf.mxu0 }
 0x164   : > { %v1154_v39 = vpop.f32.mrf.mxu0  ;;  %v1175_v42 = vpop.f32.mrf.mxu1 }
 0x165   : > { %v1155_v40 = vadd.f32 %v1154_v39, %v1153_v37 }
 0x166   : > { %v1156_v41 = vpop.f32.mrf.mxu0  ;;  %v1176_v46 = vpop.f32.mrf.mxu1 }
 0x167   : > { %v656_v43 = vadd.f32 %v1155_v40, %v473_v38  ;;  %v1177_v48 = vadd.f32 %v1176_v46, %v1175_v42 }
 0x168   : > { %v1157_v45 = vpop.f32.mrf.mxu0  ;;  %v1178_v49 = vpop.f32.mrf.mxu1 }
 0x169   : > { %v1158_v47 = vadd.f32 %v1157_v45, %v1156_v41  ;;  %v843_v51 = vadd.f32 %v1177_v48, %v656_v43 }
 0x16a   : > { %v1179_v52 = vpop.f32.mrf.mxu1 }
 0x16b   : > { %v657_v50 = vadd.f32 %v1158_v47, %v474_v44  ;;  %845 = vst [vmem:[%s1840_s16] sm:$0xff] %v843_v51  ;;  %v1180_v53 = vadd.f32 %v1179_v52, %v1178_v49 }
 0x16d   : > { %v844_v54 = vadd.f32 %v1180_v53, %v657_v50 }
 0x16f   : > { %846 = vst [vmem:[%s1840_s16 + $0x8] sm:$0xff] %v844_v54 }
 0x170   : > { %1468 = shalt.err (!%p1465_p8)
}
 0x171   : > { %s1469_s6 = scalar_lea.hbm %s1892_s23, 256  ;;  %s1473_s8 = scalar_lea.hbm %s2012_s9, 512 }
 0x172   : > { %p1470_p9 = scmp.ne.s32.totalorder %s1892_s23, %s1469_s6  ;;  %p1474_p11 = scmp.lt.s32.totalorder %s1892_s23, %s2012_s9 }
 0x173   : > { %p1475_p3 = scmp.lt.s32.totalorder %s1473_s8, %s1469_s6 }
 0x174   : > { %p1471_p10 = pnand %p1470_p9, %p1724_p12 }
 0x175   : > { %p1476_p7 = por %p1475_p3, %p1474_p11 }
 0x176   : > { %p1472_p4 = pneg %p1471_p10 }
 0x178   : > { %p1477_p5 = pnand %p1476_p7, %p1472_p4 }
 0x17a   : > { %1480 = shalt.err (!%p1477_p5)
}
 0x17b   : > { %s1595_s1 = smov 128   ;;  %s1596_s5 = smov 8  }
 0x17c   : > { %1189 = dma.vmem_to_hbm [thread:$0]  (%p1724_p12), %s1894_s30, 256, %s1892_s23, %s1899_s28, %s1595_s1, %s1595_s1, %s1596_s5  }
 0x17d PF: > { %s2013_s29 = sld [smem:[#allocation20_spill]] }
 0x17e   : > { %s2014_s15 = sld [smem:[#allocation15_spill]] }
 0x183   : > { %p1209_p6 = scmp.ge.s32.totalorder %s2013_s29, 2 }
 0x184   : > { %s879_s13 = sand.u32 1, %s2014_s15  }
 0x185   : > { %p1205_p13 = pnand %p1209_p6, %p1736_p2  ;;  %s880_s21 = scalar_lea.sflag [#allocation4], %s879_s13 }
 0x187   : > { %p1206_p0 = pneg %p1205_p13 }
 0x189   : > { %1538 = dma.done.wait (%p1206_p0), %s880_s21, 256  }
 0x18a   : > { %1540 = vsyncadd (%p1206_p0), %s880_s21, 4294967040  ;;  %s27_s28 = sadd.s32 1, %s2013_s29   ;;  %s2016_s12 = sld [smem:[#allocation16_spill]] }
 0x18b   : > { %p24_p1 = scmp.ge.s32.totalorder %s27_s28, 6   ;;  %s2017_s20 = sld [smem:[#allocation23_spill]] }
 0x18c   : > { %s2018_s24 = sld [smem:[#allocation17_spill]]  ;;  %s2024_s18 = smov %s1547_s19 }
 0x18d   : > { %s2019_s23 = sld [smem:[#allocation24_spill]]  ;;  %s2026_s21 = smov %s1559_s22 }
 0x18e   : > { %s2020_s30 = sld [smem:[#allocation18_spill]] }
 0x18f   : > { %s2021_s25 = sld [smem:[#allocation19_spill]] }
 0x190   : > { %s2022_s26 = sld [smem:[#allocation21_spill]]  ;;  %s2025_s19 = smov %s2016_s12 }
 0x191   : > { %s2023_s27 = sld [smem:[#allocation22_spill]]  ;;  %26 = sbr.rel (!%p24_p1) target bundleno = 17 (0x11), region = 129 }
 0x192   : > { %s2027_s22 = smov %s2018_s24 }
 0x194   : > { %s2028_s24 = smov %s2020_s30 }
 0x196   :  { %885 = vsyncpa [#allocation3], 1 }
 0x197   :  { %887 = vsyncpa [#allocation3 + $0x1], 1 }
 0x198   :  { %888 = vsyncpa [#allocation6], 1 }
 0x199   :  { %890 = vsyncpa [#allocation6 + $0x1], 1 }
 0x19a   :  { %891 = vsyncpa [#allocation9], 1 }
 0x19b   :  { %893 = vsyncpa [#allocation9 + $0x1], 1 }
 0x19c   :  { %894 = vsyncpa [#allocation4], 1 }
 0x19d   :  { %896 = vsyncpa [#allocation4 + $0x1], 1 }

</bundles_post_ra>
